<compile_context>
chip_gen: v6e
topology: v6e:2x2x1
jax: 0.10.0
libtpu: 0.0.40
codegen_flags: <defaults>
</compile_context>

<pallas_src>
import jax
import jax.numpy as jnp
from jax.experimental import pallas as pl
from jax.experimental.pallas import tpu as pltpu

IN_FEATURES = 10
HIDDEN = 10
OUT_FEATURES = 10

LANE = 128            # TPU lane width
DEFAULT_BLOCK_B = 1024  # batch tile on the lane axis (multiple of 128)


def mlp_kernel(xT_ref, w1_ref, b1_ref, w2_ref, b2_ref, oT_ref):
    # xT_ref : (IN_FEATURES, TB)   -- feature-major activation tile
    # w1_ref : (HIDDEN, IN_FEATURES)   PyTorch [out, in] layout (no transpose needed)
    # b1_ref : (HIDDEN, 1)
    # w2_ref : (OUT_FEATURES, HIDDEN)
    # b2_ref : (OUT_FEATURES, 1)
    # oT_ref : (OUT_FEATURES, TB)
    xT = xT_ref[...]
    # Layer 1: h^T = W1 @ x^T + b1, ReLU  (output N = batch tile -> lane-dense)
    h = jnp.dot(w1_ref[...], xT, preferred_element_type=jnp.float32)
    h = jnp.maximum(h + b1_ref[...], 0.0)
    # Layer 2: y^T = W2 @ h^T + b2
    y = jnp.dot(w2_ref[...], h, preferred_element_type=jnp.float32)
    oT_ref[...] = (y + b2_ref[...]).astype(oT_ref.dtype)


def mein_netz_forward(x, w1, b1, w2, b2, *, block_batch=DEFAULT_BLOCK_B):
    """Forward pass of MeinNetz.  x: (batch, 10); w*: [out, in]; b*: [out]."""
    batch = x.shape[0]

    # Pad batch up to a multiple of the lane width, pick the batch tile, then
    # pad so the grid divides evenly (padded rows compute garbage and are
    # sliced off; they never touch real data).
    padded = pl.cdiv(batch, LANE) * LANE
    tb = min(block_batch, padded)
    num_tiles = pl.cdiv(padded, tb)
    padded = num_tiles * tb

    x_pad = jnp.pad(x, ((0, padded - batch), (0, 0)))
    xT = x_pad.T                              # (10, padded)  feature-major
    b1_col = b1.reshape(HIDDEN, 1)
    b2_col = b2.reshape(OUT_FEATURES, 1)

    resident = lambda shape: pl.BlockSpec(shape, lambda i: (0, 0))

    outT = pl.pallas_call(
        mlp_kernel,
        out_shape=jax.ShapeDtypeStruct((OUT_FEATURES, padded), x.dtype),
        grid=(num_tiles,),
        in_specs=[
            pl.BlockSpec((IN_FEATURES, tb), lambda i: (0, i)),   # streamed x^T
            resident((HIDDEN, IN_FEATURES)),                     # W1 (resident)
            resident((HIDDEN, 1)),                               # b1
            resident((OUT_FEATURES, HIDDEN)),                    # W2
            resident((OUT_FEATURES, 1)),                         # b2
        ],
        out_specs=pl.BlockSpec((OUT_FEATURES, tb), lambda i: (0, i)),
        compiler_params=pltpu.CompilerParams(
            dimension_semantics=("parallel",),
        ),
    )(xT, w1, b1_col, w2, b2_col)

    return outT[:, :batch].T                  # back to (batch, 10)


def reference_forward(x, w1, b1, w2, b2):
    h = jnp.maximum(x @ w1.T + b1, 0.0)
    return h @ w2.T + b2


if __name__ == "__main__":
    key = jax.random.PRNGKey(0)
    k_x, k_w1, k_b1, k_w2, k_b2 = jax.random.split(key, 5)

    batch = 8
    bound1 = 1.0 / (IN_FEATURES ** 0.5)
    bound2 = 1.0 / (HIDDEN ** 0.5)
    x = jax.random.normal(k_x, (batch, IN_FEATURES), dtype=jnp.float32)
    w1 = jax.random.uniform(k_w1, (HIDDEN, IN_FEATURES), jnp.float32, -bound1, bound1)
    b1 = jax.random.uniform(k_b1, (HIDDEN,), jnp.float32, -bound1, bound1)
    w2 = jax.random.uniform(k_w2, (OUT_FEATURES, HIDDEN), jnp.float32, -bound2, bound2)
    b2 = jax.random.uniform(k_b2, (OUT_FEATURES,), jnp.float32, -bound2, bound2)

    out = mein_netz_forward(x, w1, b1, w2, b2)
    jax.block_until_ready(out)

    ref = reference_forward(x, w1, b1, w2, b2)
    assert out.shape == (batch, OUT_FEATURES)
    assert jnp.allclose(out, ref, atol=1e-5, rtol=1e-5)

    print("KERNEL_OK")
</pallas_src>

<mosaic_0001>
module attributes {stable_mosaic.version = 11 : i64} {
  func.func @mlp_kernel(%arg0: i32, %arg1: memref<10x128xf32, #tpu.memory_space<vmem>>, %arg2: memref<10x10xf32, #tpu.memory_space<vmem>>, %arg3: memref<10x1xf32, #tpu.memory_space<vmem>>, %arg4: memref<10x10xf32, #tpu.memory_space<vmem>>, %arg5: memref<10x1xf32, #tpu.memory_space<vmem>>, %arg6: memref<10x128xf32, #tpu.memory_space<vmem>>) attributes {dimension_semantics = [#tpu.dimension_semantics<parallel>], iteration_bounds = array<i64: 1>, scalar_prefetch = 0 : i64, scratch_operands = 0 : i64, tpu.core_type = #tpu.core_type<tc>, window_params = [{transform_indices = @transform_0, window_bounds = array<i64: 10, 128>}, {pipeline_mode = #tpu.pipeline_mode<synchronous>, transform_indices = @transform_1, window_bounds = array<i64: 10, 10>}, {pipeline_mode = #tpu.pipeline_mode<synchronous>, transform_indices = @transform_2, window_bounds = array<i64: 10, 1>}, {pipeline_mode = #tpu.pipeline_mode<synchronous>, transform_indices = @transform_3, window_bounds = array<i64: 10, 10>}, {pipeline_mode = #tpu.pipeline_mode<synchronous>, transform_indices = @transform_4, window_bounds = array<i64: 10, 1>}, {transform_indices = @transform_5, window_bounds = array<i64: 10, 128>}]} {
    %c0 = arith.constant 0 : index
    %c0_0 = arith.constant 0 : index
    %0 = vector.load %arg1[%c0, %c0_0] : memref<10x128xf32, #tpu.memory_space<vmem>>, vector<10x128xf32>
    %c0_1 = arith.constant 0 : index
    %c0_2 = arith.constant 0 : index
    %1 = vector.load %arg2[%c0_1, %c0_2] : memref<10x10xf32, #tpu.memory_space<vmem>>, vector<10x10xf32>
    %cst = arith.constant dense<0.000000e+00> : vector<10x128xf32>
    %2 = tpu.matmul %1, %0, %cst {dimension_numbers = #tpu.dot_dimension_numbers<[1], [0], [0], [1], [0, 0, 1, 1], [], []>} : vector<10x10xf32>, vector<10x128xf32>, vector<10x128xf32> -> vector<10x128xf32>
    %c0_3 = arith.constant 0 : index
    %c0_4 = arith.constant 0 : index
    %3 = vector.load %arg3[%c0_3, %c0_4] : memref<10x1xf32, #tpu.memory_space<vmem>>, vector<10x1xf32>
    %4 = vector.broadcast %3 : vector<10x1xf32> to vector<10x128xf32>
    %5 = arith.addf %2, %4 : vector<10x128xf32>
    %cst_5 = arith.constant 0.000000e+00 : f32
    %6 = vector.broadcast %cst_5 : f32 to vector<10x128xf32>
    %7 = arith.maximumf %5, %6 : vector<10x128xf32>
    %c0_6 = arith.constant 0 : index
    %c0_7 = arith.constant 0 : index
    %8 = vector.load %arg4[%c0_6, %c0_7] : memref<10x10xf32, #tpu.memory_space<vmem>>, vector<10x10xf32>
    %cst_8 = arith.constant dense<0.000000e+00> : vector<10x128xf32>
    %9 = tpu.matmul %8, %7, %cst_8 {dimension_numbers = #tpu.dot_dimension_numbers<[1], [0], [0], [1], [0, 0, 1, 1], [], []>} : vector<10x10xf32>, vector<10x128xf32>, vector<10x128xf32> -> vector<10x128xf32>
    %c0_9 = arith.constant 0 : index
    %c0_10 = arith.constant 0 : index
    %10 = vector.load %arg5[%c0_9, %c0_10] : memref<10x1xf32, #tpu.memory_space<vmem>>, vector<10x1xf32>
    %11 = vector.broadcast %10 : vector<10x1xf32> to vector<10x128xf32>
    %12 = arith.addf %9, %11 : vector<10x128xf32>
    %c0_11 = arith.constant 0 : index
    %c0_12 = arith.constant 0 : index
    %13 = vector.load %arg6[%c0_11, %c0_12] : memref<10x128xf32, #tpu.memory_space<vmem>>, vector<10x128xf32>
    tpu.vector_store %arg6[%c0_11, %c0_12], %12 {strides = array<i32>} : memref<10x128xf32, #tpu.memory_space<vmem>>, vector<10x128xf32>,
    return
  }
  func.func @transform_0(%arg0: i32) -> (i32, i32) {
    %c0_i32 = arith.constant 0 : i32
    %c0_i32_0 = arith.constant 0 : i32
    return %c0_i32, %arg0 : i32, i32
  }
  func.func @transform_1(%arg0: i32) -> (i32, i32) {
    %c0_i32 = arith.constant 0 : i32
    %c0_i32_0 = arith.constant 0 : i32
    %c0_i32_1 = arith.constant 0 : i32
    return %c0_i32, %c0_i32_0 : i32, i32
  }
  func.func @transform_2(%arg0: i32) -> (i32, i32) {
    %c0_i32 = arith.constant 0 : i32
    %c0_i32_0 = arith.constant 0 : i32
    %c0_i32_1 = arith.constant 0 : i32
    return %c0_i32, %c0_i32_0 : i32, i32
  }
  func.func @transform_3(%arg0: i32) -> (i32, i32) {
    %c0_i32 = arith.constant 0 : i32
    %c0_i32_0 = arith.constant 0 : i32
    %c0_i32_1 = arith.constant 0 : i32
    return %c0_i32, %c0_i32_0 : i32, i32
  }
  func.func @transform_4(%arg0: i32) -> (i32, i32) {
    %c0_i32 = arith.constant 0 : i32
    %c0_i32_0 = arith.constant 0 : i32
    %c0_i32_1 = arith.constant 0 : i32
    return %c0_i32, %c0_i32_0 : i32, i32
  }
  func.func @transform_5(%arg0: i32) -> (i32, i32) {
    %c0_i32 = arith.constant 0 : i32
    %c0_i32_0 = arith.constant 0 : i32
    return %c0_i32, %arg0 : i32, i32
  }
}

</mosaic_0001>

<bundles_post_ra>
// kernel: tpu_custom_call.1
= control target key start
LH: loop header
LB: loop body
LE: loop exit
PB: predicated region body
PF: predicated region fallthrough
CT: control target
= control target key end

     0   :  { %10 = vsyncpa [#allocation3], 0  ;;  %s414_s0 = inlined_call_operand.vmem [shape: f32[10,128], index: 0, kind: input, shape index: {}]   ;;  %s415_s1 = inlined_call_operand.vmem [shape: f32[10,10], index: 1, kind: input, shape index: {}]   ;;  %s416_s2 = inlined_call_operand.vmem [shape: f32[10,1], index: 2, kind: input, shape index: {}]   ;;  %s417_s3 = inlined_call_operand.hbm [shape: f32[10,10], index: 3, kind: input, shape index: {}]   ;;  %s418_s4 = inlined_call_operand.vmem [shape: f32[10,1], index: 4, kind: input, shape index: {}]   ;;  %s419_s5 = inlined_call_operand.hbm [shape: f32[10,128], index: 5, kind: output, shape index: {}]  }
   0x1   :  { %11 = vsyncpa [#allocation4], 0  ;;  %s335_s18 = smov [#allocation2]  }
   0x2   :  { %s23_s19 = sshll.u32 %s335_s18, 4  ;;  %s24_s19 = int_to_ptr.vmem [resolvable:$true] %s23_s19 }
   0x3   :  { %s299_s20 = scalar_lea.vmem %s24_s19, 256  ;;  %p304_p1 = scmp.lt.s32.totalorder %s24_s19, %s24_s19 }
   0x4   :  { %p300_p0 = scmp.ne.s32.totalorder %s24_s19, %s299_s20  ;;  %p305_p2 = scmp.lt.s32.totalorder %s299_s20, %s299_s20 }
   0x6   :  { %p306_p3 = por %p305_p2, %p304_p1 }
   0x8   :  { %p307_p4 = pnand %p306_p3, %p300_p0 }
   0xa   :  { %310 = shalt.err (!%p307_p4)
}
   0xb   :  { %s336_s21 = smov 128   ;;  %s337_s22 = smov 8  }
   0xc   :  { %29 = dma.hbm_to_vmem [thread:$0]  %s417_s3, 256, %s24_s19, [#allocation3], %s336_s21, %s336_s21, %s337_s22  }
   0xd   :  { %331 = dma.done.wait [#allocation3], 256  }
   0xe   :  { %332 = vsyncadd [#allocation3], 4294967040  ;;  %v338_v0 = vmov 0   ;;  %vm58_vm0 = vcmask 1041408   ;;  %vm51_vm1 = vcmask 80896   ;;  %v35_v2 = vld [vmem:[%s414_s0] sm:$0xff] }
   0xf   :  { %289 = vset.pattern.permute.xlu0 %v338_v0  ;;  %290 = vset.pattern.permute.xlu1 %v338_v0  ;;  %v36_v1 = vld [vmem:[%s414_s0 + $0x8] sm:$0x3]  ;;  %v37_v3 = vld [vmem:[%s415_s1] sm:$0xff] }
  0x10   :  { %270 = vmatprep.subr.msk.mxu0 %vm58_vm0, %v36_v1  ;;  %274 = vmatprep.mubr.msk.f32.mxu0 %vm51_vm1, %v37_v3  ;;  %v40_v4 = vld [vmem:[%s416_s2 + $0x8] sm:$0x3]  ;;  %v39_v6 = vld [vmem:[%s416_s2] sm:$0xff]  ;;  %s339_s2 = smov [#allocation5]  }
  0x11   :  { %271 = vmatpush3.msk.msra.mxu0 %vm58_vm0, %v36_v1  ;;  %v38_v5 = vld [vmem:[%s415_s1 + $0x8] sm:$0x3]  ;;  %48 = vperm.xlu0 %289, %v40_v4   ;;  %v139_v7 = vld [vmem:[#allocation2] sm:$0xff] }
  0x12   :  { %272 = vmatprep.subr.mxu0 %v35_v2  ;;  %281 = vmatprep.mubr.msk.f32.mxu1 %vm51_vm1, %v139_v7  ;;  %v141_v8 = vld [vmem:[%s418_s4] sm:$0xff]  ;;  %v142_v9 = vld [vmem:[%s418_s4 + $0x8] sm:$0x3]  ;;  %s244_s4 = sshll.u32 %s339_s2, 4  ;;  %s245_s4 = int_to_ptr.vmem [resolvable:$true] %s244_s4 }
  0x13   :  { %273 = vmatpush3.msra.mxu0 %v35_v2  ;;  %145 = vperm.xlu1 %290, %v141_v8   ;;  %v140_v18 = vld [vmem:[#allocation2 + $0x8] sm:$0x3]  ;;  %s311_s13 = scalar_lea.vmem %s245_s4, 256  ;;  %p316_p6 = scmp.lt.s32.totalorder %s245_s4, %s245_s4 }
  0x14   :  { %275 = vmatmul.mubr.msk.f32.vlgmr.msra.gmra.mxu0 %vm51_vm1, %v38_v5  ;;  %p312_p5 = scmp.ne.s32.totalorder %s245_s4, %s311_s13  ;;  %p317_p7 = scmp.lt.s32.totalorder %s311_s13, %s311_s13 }
  0x15   :  { %43 = vperm.xlu0 %289, %v39_v6  }
  0x16   :  { %p318_p8 = por %p317_p7, %p316_p6 }
  0x17   :  { %150 = vperm.xlu1 %290, %v142_v9  }
  0x18   :  { %p319_p9 = pnand %p318_p8, %p312_p5 }
  0x8c   :  { %v49_v10 = vpop.permute.xlu0 %48 }
  0x8e   :  { %v146_v19 = vpop.permute.xlu1 %145 }
  0x90   :  { %v44_v13 = vpop.permute.xlu0 %43 }
  0x92   :  { %v151_v20 = vpop.permute.xlu1 %150 }
  0xd4   :  { %v276_v11 = vpop.f32.mrf.mxu0 }
  0xd5   :  { %v134_v12 = vadd.f32 %v276_v11, %v49_v10 }
  0xd6   :  { %v128_v14 = vpop.f32.mrf.mxu0 }
  0xd7   :  { %v138_v15 = vmax.f32 %v134_v12, 0.0  ;;  %v129_v16 = vadd.f32 %v128_v14, %v44_v13 }
  0xd9   :  { %v137_v17 = vmax.f32 %v129_v16, 0.0  ;;  %277 = vmatprep.subr.msk.mxu1 %vm58_vm0, %v138_v15 }
  0xda   :  { %278 = vmatpush3.msk.msra.mxu1 %vm58_vm0, %v138_v15 }
  0xdb   :  { %279 = vmatprep.subr.mxu1 %v137_v17 }
  0xdc   :  { %280 = vmatpush3.msra.mxu1 %v137_v17 }
  0xdd   :  { %282 = vmatmul.mubr.msk.f32.vlgmr.msra.gmra.mxu1 %vm51_vm1, %v140_v18 }
 0x19d   :  { %v283_v21 = vpop.f32.mrf.mxu1 }
 0x19e   :  { %v234_v22 = vadd.f32 %v283_v21, %v151_v20 }
 0x19f   :  { %v228_v23 = vpop.f32.mrf.mxu1 }
 0x1a0   :  { %238 = vst [vmem:[#allocation5 + $0x8] sm:$0x3] %v234_v22  ;;  %v229_v24 = vadd.f32 %v228_v23, %v146_v19 }
 0x1a2   :  { %237 = vst [vmem:[#allocation5] sm:$0xff] %v229_v24 }
 0x1a3   :  { %322 = shalt.err (!%p319_p9)
}
 0x1a4   :  { %250 = dma.vmem_to_hbm [thread:$0]  %s245_s4, 256, %s419_s5, [#allocation4], %s336_s21, %s336_s21, %s337_s22  }
 0x1a5   :  { %333 = dma.done.wait [#allocation4], 256  }
 0x1a6   :  { %334 = vsyncadd [#allocation4], 4294967040 }
 0x1a7   :  { %254 = vsyncpa [#allocation3], 1 }
 0x1a8   :  { %255 = vsyncpa [#allocation4], 1 }

</bundles_post_ra>
